<compile_context>
chip_gen: v5e
topology: v5e:2x2
jax: 0.10.0
libtpu: 0.0.40
codegen_flags: <defaults>
</compile_context>

<pallas_src>
import jax
import jax.numpy as jnp
from jax.experimental import pallas as pl
from jax.experimental.pallas import tpu as pltpu

_PAD = 512  # padding grain: multiple of 32 (int8 sublane pack) and 128 (lanes)


def _round_up(x: int, m: int) -> int:
    return ((x + m - 1) // m) * m


def _vmem_capacity_bytes() -> int:
    """Physical VMEM per TensorCore; conservative fallback if the query fails."""
    try:
        info = pltpu.get_tpu_info()
        for attr in ("vmem_capacity_bytes", "vmem_size_bytes", "vmem_bytes"):
            v = getattr(info, attr, None)
            if v:
                return int(v)
    except Exception:
        pass
    return 64 << 20  # v7x physical VMEM (smallest of the supported generations)


def prepare_adjacency(adjacency, dtype=jnp.int8):
    """One-time per-graph prep (amortize across layers / epochs).

    Casts the dense 0/1 adjacency to a narrow dtype (int8 by default -- exact
    for 0/1 or small-integer edge weights; pass jnp.bfloat16 for weighted
    graphs) and zero-pads both dims to a multiple of _PAD so the aggregation
    kernel streams aligned, unmasked tiles.
    """
    n, m = adjacency.shape
    assert n == m, "adjacency must be square"
    n_p = _round_up(n, _PAD)
    return jnp.zeros((n_p, n_p), dtype).at[:n, :n].set(adjacency.astype(dtype))


# --------------------------- kernels -----------------------------------------


def _linear_kernel(x_ref, w_ref, h_ref):
    # x_ref: (tl, dim_in) bf16, w_ref: (dim_in, dim_out_p) bf16 (pre-transposed),
    # h_ref: (tl, dim_out_p) bf16.  f32 MXU accumulation.
    h_ref[...] = jnp.dot(
        x_ref[...], w_ref[...], preferred_element_type=jnp.float32
    ).astype(h_ref.dtype)


def _aggregate_kernel(a_ref, h_ref, o_ref, acc_ref):
    # a_ref: (tm, tk) int8 adjacency tile (cast to bf16 on the VPU just before
    #        the MXU dot), h_ref: (tk, dim_out_p) bf16,
    # o_ref: (tm, dim_out_p) output dtype, acc_ref: (tm, dim_out_p) f32 scratch.
    k = pl.program_id(1)

    @pl.when(k == 0)
    def _():
        acc_ref[...] = jnp.zeros_like(acc_ref)

    acc_ref[...] += jnp.dot(
        a_ref[...].astype(jnp.bfloat16),
        h_ref[...],
        preferred_element_type=jnp.float32,
    )

    @pl.when(k == pl.num_programs(1) - 1)
    def _():
        o_ref[...] = acc_ref[...].astype(o_ref.dtype)


# --------------------------- wrapper ------------------------------------------


def vanilla_gnn_layer(x, adjacency, weight):
    """out = adjacency @ (x @ weight.T) via Pallas TPU kernels.

    `adjacency` should preferably be the result of `prepare_adjacency()` (int8,
    zero-padded -- amortized across layers); a raw dense float adjacency is
    also accepted and converted here (unamortized).
    """
    n, dim_in = x.shape
    dim_out, dim_in_w = weight.shape
    assert dim_in_w == dim_in

    if adjacency.dtype not in (jnp.int8, jnp.bfloat16):
        assert adjacency.shape == (n, n)
        adjacency = prepare_adjacency(adjacency)  # unamortized fallback

    a_p = adjacency
    n_rows_p, n_cols_p = a_p.shape
    assert n_rows_p >= n and n_cols_p >= n
    assert n_rows_p % _PAD == 0 and n_cols_p % _PAD == 0
    a_itemsize = jnp.dtype(a_p.dtype).itemsize
    out_dtype = x.dtype
    out_itemsize = jnp.dtype(out_dtype).itemsize

    # Lane-dense output width (multiple of 128 -> unmasked stores).
    dim_out_p = _round_up(dim_out, 128)

    # ---- small wrapper-side prep (O(N*dim_in), negligible vs the N^2 stream) -
    w_t = (
        jnp.zeros((dim_in, dim_out_p), jnp.bfloat16)
        .at[:, :dim_out]
        .set(weight.astype(jnp.bfloat16).T)
    )
    x_p = (
        jnp.zeros((n_cols_p, dim_in), jnp.bfloat16)
        .at[:n, :]
        .set(x.astype(jnp.bfloat16))
    )

    # ---- prologue kernel: H = X @ W_t (bf16 in / f32 acc / bf16 out), once ---
    tl = _PAD
    h = pl.pallas_call(
        _linear_kernel,
        out_shape=jax.ShapeDtypeStruct((n_cols_p, dim_out_p), jnp.bfloat16),
        grid_spec=pltpu.PrefetchScalarGridSpec(
            num_scalar_prefetch=0,
            grid=(n_cols_p // tl,),
            in_specs=[
                pl.BlockSpec((tl, dim_in), lambda i: (i, 0)),          # x
                pl.BlockSpec((dim_in, dim_out_p), lambda i: (0, 0)),   # W_t (full)
            ],
            out_specs=pl.BlockSpec((tl, dim_out_p), lambda i: (i, 0)),
        ),
        compiler_params=pltpu.CompilerParams(
            dimension_semantics=("parallel",),
        ),
    )(x_p, w_t)

    # ---- tile selection for the aggregation, generation-aware VMEM budget ----
    cap = _vmem_capacity_bytes()
    budget = min(int(cap * 0.85), 110 << 20)  # leave compiler scratch headroom

    def agg_vmem(tm_, tk_):
        return (
            2 * tm_ * tk_ * a_itemsize            # A tiles (double-buffered)
            + 2 * tk_ * dim_out_p * 2             # H tiles (double-buffered)
            + 2 * tm_ * dim_out_p * out_itemsize  # output tiles
            + tm_ * dim_out_p * 4                 # f32 accumulator scratch
        )

    tm = _PAD
    if agg_vmem(tm, n_cols_p) <= budget:
        tk = n_cols_p  # H fully VMEM-resident (constant block index, single k step)
    else:
        # Large-graph fallback: k-tiled, bigger tiles to amortize H re-reads.
        tm = 1024 if n_rows_p % 1024 == 0 else _PAD
        tk = 2048 if n_cols_p % 2048 == 0 else (1024 if n_cols_p % 1024 == 0 else _PAD)
        while agg_vmem(tm, tk) > budget and tk > _PAD:
            tk //= 2
        if agg_vmem(tm, tk) > budget and tm > _PAD:
            tm = _PAD

    # ---- main kernel: out = A @ H, tiled over (row-tile i, reduction k) ------
    out_p = pl.pallas_call(
        _aggregate_kernel,
        out_shape=jax.ShapeDtypeStruct((n_rows_p, dim_out_p), out_dtype),
        grid_spec=pltpu.PrefetchScalarGridSpec(
            num_scalar_prefetch=0,
            grid=(n_rows_p // tm, n_cols_p // tk),
            in_specs=[
                pl.BlockSpec((tm, tk), lambda i, k: (i, k)),          # adjacency (int8)
                pl.BlockSpec((tk, dim_out_p), lambda i, k: (k, 0)),   # H (bf16)
            ],
            out_specs=pl.BlockSpec((tm, dim_out_p), lambda i, k: (i, 0)),
            scratch_shapes=[pltpu.VMEM((tm, dim_out_p), jnp.float32)],
        ),
        compiler_params=pltpu.CompilerParams(
            dimension_semantics=("parallel", "arbitrary"),
            vmem_limit_bytes=int(budget),
        ),
    )(a_p, h)

    # Slice off padding; dtype already matches the caller's.
    return out_p[:n, :dim_out]


if __name__ == "__main__":
    # Small synthetic "Cora-like" problem: N nodes, dim_in features, dim_out hidden.
    N, DIM_IN, DIM_OUT = 256, 32, 64

    key = jax.random.PRNGKey(0)
    k_x, k_a, k_w = jax.random.split(key, 3)

    x = jax.random.normal(k_x, (N, DIM_IN), dtype=jnp.float32)

    # Dense 0/1 adjacency (what to_dense_adj produces).
    adjacency = jax.random.bernoulli(k_a, p=0.05, shape=(N, N)).astype(jnp.float32)

    # PyTorch Linear default init: U(-1/sqrt(fan_in), 1/sqrt(fan_in)).
    bound = 1.0 / jnp.sqrt(jnp.float32(DIM_IN))
    weight = jax.random.uniform(
        k_w, (DIM_OUT, DIM_IN), minval=-bound, maxval=bound, dtype=jnp.float32
    )

    # One-time graph prep (amortized across layers / epochs in a real model).
    adj_prepared = prepare_adjacency(adjacency)

    out = vanilla_gnn_layer(x, adj_prepared, weight)
    out = jax.block_until_ready(out)

    # Reference check against plain-JAX semantics of the PyTorch forward.
    # x/H are rounded to bf16 before aggregation (f32 accumulation keeps the
    # error bounded), so tolerances are loosened vs the pure-f32 reference.
    ref = adjacency @ (x @ weight.T)
    assert out.shape == (N, DIM_OUT)
    assert out.dtype == x.dtype
    assert jnp.allclose(out, ref, atol=5e-2, rtol=5e-2), "mismatch vs reference"

    print("KERNEL_OK")
</pallas_src>

<mosaic_0001>
module attributes {stable_mosaic.version = 11 : i64} {
  func.func @_linear_kernel(%arg0: i32, %arg1: memref<512x32xbf16, #tpu.memory_space<vmem>>, %arg2: memref<32x128xbf16, #tpu.memory_space<vmem>>, %arg3: memref<512x128xbf16, #tpu.memory_space<vmem>>) attributes {dimension_semantics = [#tpu.dimension_semantics<parallel>], iteration_bounds = array<i64: 1>, scalar_prefetch = 0 : i64, scratch_operands = 0 : i64, tpu.core_type = #tpu.core_type<tc>, window_params = [{transform_indices = @transform_0, window_bounds = array<i64: 512, 32>}, {pipeline_mode = #tpu.pipeline_mode<synchronous>, transform_indices = @transform_1, window_bounds = array<i64: 32, 128>}, {transform_indices = @transform_2, window_bounds = array<i64: 512, 128>}]} {
    %c0 = arith.constant 0 : index
    %c0_0 = arith.constant 0 : index
    %0 = vector.load %arg1[%c0, %c0_0] : memref<512x32xbf16, #tpu.memory_space<vmem>>, vector<512x32xbf16>
    %c0_1 = arith.constant 0 : index
    %c0_2 = arith.constant 0 : index
    %1 = vector.load %arg2[%c0_1, %c0_2] : memref<32x128xbf16, #tpu.memory_space<vmem>>, vector<32x128xbf16>
    %cst = arith.constant dense<0.000000e+00> : vector<512x128xf32>
    %2 = tpu.matmul %0, %1, %cst {dimension_numbers = #tpu.dot_dimension_numbers<[1], [0], [0], [1], [0, 0, 1, 1], [], []>} : vector<512x32xbf16>, vector<32x128xbf16>, vector<512x128xf32> -> vector<512x128xf32>
    %3 = arith.truncf %2 : vector<512x128xf32> to vector<512x128xbf16>
    %c0_3 = arith.constant 0 : index
    %c0_4 = arith.constant 0 : index
    %4 = vector.load %arg3[%c0_3, %c0_4] : memref<512x128xbf16, #tpu.memory_space<vmem>>, vector<512x128xbf16>
    tpu.vector_store %arg3[%c0_3, %c0_4], %3 {strides = array<i32>} : memref<512x128xbf16, #tpu.memory_space<vmem>>, vector<512x128xbf16>,
    return
  }
  func.func @transform_0(%arg0: i32) -> (i32, i32) {
    %c0_i32 = arith.constant 0 : i32
    %c0_i32_0 = arith.constant 0 : i32
    return %arg0, %c0_i32 : i32, i32
  }
  func.func @transform_1(%arg0: i32) -> (i32, i32) {
    %c0_i32 = arith.constant 0 : i32
    %c0_i32_0 = arith.constant 0 : i32
    %c0_i32_1 = arith.constant 0 : i32
    return %c0_i32, %c0_i32_0 : i32, i32
  }
  func.func @transform_2(%arg0: i32) -> (i32, i32) {
    %c0_i32 = arith.constant 0 : i32
    %c0_i32_0 = arith.constant 0 : i32
    return %arg0, %c0_i32 : i32, i32
  }
}

</mosaic_0001>

<bundles_post_ra>
// kernel: tpu_custom_call.1
= control target key start
LH: loop header
LB: loop body
LE: loop exit
PB: predicated region body
PF: predicated region fallthrough
CT: control target
= control target key end

     0   :  { %s1248_s0 = inlined_call_operand.vmem [shape: bf16[512,32], index: 0, kind: input, shape index: {}]   ;;  %s1249_s1 = inlined_call_operand.vmem [shape: bf16[32,128], index: 1, kind: input, shape index: {}]   ;;  %s1250_s2 = inlined_call_operand.hbm [shape: bf16[512,128], index: 2, kind: output, shape index: {}]  }
   0x1   :  { %v866_v0 = vld [vmem:[%s1249_s1 + $0x8] sm:$0xff]  ;;  %v865_v1 = vld [vmem:[%s1249_s1] sm:$0xff] }
   0x2   :  { %356 = vmatpush.bf16.msra.mxu0 %v866_v0  ;;  %1058 = vmatpush.bf16.msra.mxu1 %v866_v0 }
   0x3   :  { %1059 = vmatpush.bf16.msra.mxu2 %v866_v0  ;;  %1060 = vmatpush.bf16.msra.mxu3 %v866_v0 }
   0x4   :  { %7 = vsyncpa [#allocation3], 0  ;;  %v833_v2 = vld [vmem:[%s1248_s0] sm:$0xff]  ;;  %vm253_vm0 = vcmask 261120   ;;  %v834_v6 = vld [vmem:[%s1248_s0 + $0x8] sm:$0xff]  ;;  %s653_s21 = sshll.u32 %s1250_s2, 4  ;;  %s654_s21 = int_to_ptr.hbm [resolvable:$true] %s653_s21 }
   0x5   :  { %v841_v3 = vld [vmem:[%s1248_s0 + $0x40] sm:$0xff]  ;;  %v842_v7 = vld [vmem:[%s1248_s0 + $0x48] sm:$0xff]  ;;  %v835_v10 = vld [vmem:[%s1248_s0 + $0x10] sm:$0xff]  ;;  %s1094_s22 = smov 64   ;;  %s1095_s23 = smov 4  }
   0x6   :  { %357 = vmatpush.bf16.msra.mxu0 %v865_v1  ;;  %1061 = vmatpush.bf16.msra.mxu1 %v865_v1  ;;  %v849_v4 = vld [vmem:[%s1248_s0 + $0x80] sm:$0xff]  ;;  %v850_v8 = vld [vmem:[%s1248_s0 + $0x88] sm:$0xff]  ;;  %v843_v11 = vld [vmem:[%s1248_s0 + $0x50] sm:$0xff] }
   0x7   :  { %v857_v5 = vld [vmem:[%s1248_s0 + $0xc0] sm:$0xff]  ;;  %1062 = vmatpush.bf16.msra.mxu2 %v865_v1  ;;  %1063 = vmatpush.bf16.msra.mxu3 %v865_v1  ;;  %v858_v9 = vld [vmem:[%s1248_s0 + $0xc8] sm:$0xff]  ;;  %v851_v12 = vld [vmem:[%s1248_s0 + $0x90] sm:$0xff] }
   0x8   :  { %v859_v13 = vld [vmem:[%s1248_s0 + $0xd0] sm:$0xff]  ;;  %v836_v14 = vld [vmem:[%s1248_s0 + $0x18] sm:$0xff]  ;;  %v837_v18 = vld [vmem:[%s1248_s0 + $0x20] sm:$0xff] }
   0x9   :  { %801 = vmatmul.msk.bf16.vlgmr.msra.gmra.mxu0 %vm253_vm0, %v833_v2  ;;  %809 = vmatmul.msk.bf16.vlgmr.msra.gmra.mxu1 %vm253_vm0, %v841_v3  ;;  %v844_v15 = vld [vmem:[%s1248_s0 + $0x58] sm:$0xff]  ;;  %v845_v19 = vld [vmem:[%s1248_s0 + $0x60] sm:$0xff]  ;;  %v838_v22 = vld [vmem:[%s1248_s0 + $0x28] sm:$0xff] }
   0xa   :  { %817 = vmatmul.msk.bf16.vlgmr.msra.gmra.mxu2 %vm253_vm0, %v849_v4  ;;  %825 = vmatmul.msk.bf16.vlgmr.msra.gmra.mxu3 %vm253_vm0, %v857_v5  ;;  %v852_v16 = vld [vmem:[%s1248_s0 + $0x98] sm:$0xff]  ;;  %v853_v20 = vld [vmem:[%s1248_s0 + $0xa0] sm:$0xff]  ;;  %v846_v23 = vld [vmem:[%s1248_s0 + $0x68] sm:$0xff] }
   0xb   :  { %v860_v17 = vld [vmem:[%s1248_s0 + $0xd8] sm:$0xff]  ;;  %v861_v21 = vld [vmem:[%s1248_s0 + $0xe0] sm:$0xff]  ;;  %v854_v24 = vld [vmem:[%s1248_s0 + $0xa8] sm:$0xff] }
   0xc   :  { %v862_v25 = vld [vmem:[%s1248_s0 + $0xe8] sm:$0xff]  ;;  %v839_v26 = vld [vmem:[%s1248_s0 + $0x30] sm:$0xff]  ;;  %v840_v30 = vld [vmem:[%s1248_s0 + $0x38] sm:$0xff] }
   0xd   :  { %v847_v27 = vld [vmem:[%s1248_s0 + $0x70] sm:$0xff]  ;;  %v848_v31 = vld [vmem:[%s1248_s0 + $0x78] sm:$0xff] }
   0xe   :  { %v855_v28 = vld [vmem:[%s1248_s0 + $0xb0] sm:$0xff]  ;;  %v856_v32 = vld [vmem:[%s1248_s0 + $0xb8] sm:$0xff] }
   0xf   :  { %v863_v29 = vld [vmem:[%s1248_s0 + $0xf0] sm:$0xff]  ;;  %v864_v33 = vld [vmem:[%s1248_s0 + $0xf8] sm:$0xff]  ;;  %s1093_s0 = smov [#allocation2]  }
  0x10   :  { %s651_s19 = sshll.u32 %s1093_s0, 4  ;;  %s652_s19 = int_to_ptr.vmem [resolvable:$true] %s651_s19 }
  0x19   :  { %802 = vmatmul.msk.bf16.gmra.mxu0 %vm253_vm0, %v834_v6  ;;  %810 = vmatmul.msk.bf16.gmra.mxu1 %vm253_vm0, %v842_v7 }
  0x1a   :  { %818 = vmatmul.msk.bf16.gmra.mxu2 %vm253_vm0, %v850_v8  ;;  %826 = vmatmul.msk.bf16.gmra.mxu3 %vm253_vm0, %v858_v9 }
  0x29   :  { %803 = vmatmul.msk.bf16.gmra.mxu0 %vm253_vm0, %v835_v10  ;;  %811 = vmatmul.msk.bf16.gmra.mxu1 %vm253_vm0, %v843_v11 }
  0x2a   :  { %819 = vmatmul.msk.bf16.gmra.mxu2 %vm253_vm0, %v851_v12  ;;  %827 = vmatmul.msk.bf16.gmra.mxu3 %vm253_vm0, %v859_v13 }
  0x39   :  { %804 = vmatmul.msk.bf16.gmra.mxu0 %vm253_vm0, %v836_v14  ;;  %812 = vmatmul.msk.bf16.gmra.mxu1 %vm253_vm0, %v844_v15 }
  0x3a   :  { %820 = vmatmul.msk.bf16.gmra.mxu2 %vm253_vm0, %v852_v16  ;;  %828 = vmatmul.msk.bf16.gmra.mxu3 %vm253_vm0, %v860_v17 }
  0x49   :  { %805 = vmatmul.msk.bf16.gmra.mxu0 %vm253_vm0, %v837_v18  ;;  %813 = vmatmul.msk.bf16.gmra.mxu1 %vm253_vm0, %v845_v19 }
  0x4a   :  { %821 = vmatmul.msk.bf16.gmra.mxu2 %vm253_vm0, %v853_v20  ;;  %829 = vmatmul.msk.bf16.gmra.mxu3 %vm253_vm0, %v861_v21 }
  0x59   :  { %806 = vmatmul.msk.bf16.gmra.mxu0 %vm253_vm0, %v838_v22  ;;  %814 = vmatmul.msk.bf16.gmra.mxu1 %vm253_vm0, %v846_v23 }
  0x5a   :  { %822 = vmatmul.msk.bf16.gmra.mxu2 %vm253_vm0, %v854_v24  ;;  %830 = vmatmul.msk.bf16.gmra.mxu3 %vm253_vm0, %v862_v25 }
  0x69   :  { %807 = vmatmul.msk.bf16.gmra.mxu0 %vm253_vm0, %v839_v26  ;;  %815 = vmatmul.msk.bf16.gmra.mxu1 %vm253_vm0, %v847_v27 }
  0x6a   :  { %823 = vmatmul.msk.bf16.gmra.mxu2 %vm253_vm0, %v855_v28  ;;  %831 = vmatmul.msk.bf16.gmra.mxu3 %vm253_vm0, %v863_v29 }
  0x79   :  { %808 = vmatmul.msk.bf16.gmra.mxu0 %vm253_vm0, %v840_v30  ;;  %816 = vmatmul.msk.bf16.gmra.mxu1 %vm253_vm0, %v848_v31 }
  0x7a   :  { %824 = vmatmul.msk.bf16.gmra.mxu2 %vm253_vm0, %v856_v32  ;;  %832 = vmatmul.msk.bf16.gmra.mxu3 %vm253_vm0, %v864_v33 }
  0x86   :  { %v359_v34 = vpop.f32.mrf.mxu0  ;;  %v399_v35 = vpop.f32.mrf.mxu1 }
  0x8d   :  { %v439_v36 = vpop.f32.mrf.mxu2  ;;  %v479_v37 = vpop.f32.mrf.mxu3 }
  0x8e   :  { %v361_v38 = vpop.f32.mrf.mxu0  ;;  %v401_v39 = vpop.f32.mrf.mxu1 }
  0x8f   :  { %v870_v40 = vpack.c.bf16 %v361_v38, %v359_v34  ;;  %v910_v41 = vpack.c.bf16 %v401_v39, %v399_v35 }
  0x91   :  { %871 = vst [vmem:[#allocation2] sm:$0xff] %v870_v40  }
  0x92   :  { %1034 = vst [vmem:[#allocation2 + $0x40] sm:$0xff] %v910_v41  }
  0x95   :  { %v441_v42 = vpop.f32.mrf.mxu2  ;;  %v481_v43 = vpop.f32.mrf.mxu3 }
  0x96   :  { %v950_v44 = vpack.c.bf16 %v441_v42, %v439_v36  ;;  %v990_v45 = vpack.c.bf16 %v481_v43, %v479_v37  ;;  %v364_v46 = vpop.f32.mrf.mxu0  ;;  %v404_v47 = vpop.f32.mrf.mxu1 }
  0x98   :  { %1042 = vst [vmem:[#allocation2 + $0x80] sm:$0xff] %v950_v44  }
  0x99   :  { %1050 = vst [vmem:[#allocation2 + $0xc0] sm:$0xff] %v990_v45  }
  0x9d   :  { %v444_v48 = vpop.f32.mrf.mxu2  ;;  %v484_v49 = vpop.f32.mrf.mxu3 }
  0x9e   :  { %v366_v50 = vpop.f32.mrf.mxu0  ;;  %v406_v51 = vpop.f32.mrf.mxu1 }
  0x9f   :  { %v875_v52 = vpack.c.bf16 %v366_v50, %v364_v46  ;;  %v915_v53 = vpack.c.bf16 %v406_v51, %v404_v47 }
  0xa1   :  { %1027 = vst [vmem:[#allocation2 + $0x8] sm:$0xff] %v875_v52  }
  0xa2   :  { %1035 = vst [vmem:[#allocation2 + $0x48] sm:$0xff] %v915_v53  }
  0xa5   :  { %v446_v54 = vpop.f32.mrf.mxu2  ;;  %v486_v55 = vpop.f32.mrf.mxu3 }
  0xa6   :  { %v955_v56 = vpack.c.bf16 %v446_v54, %v444_v48  ;;  %v995_v57 = vpack.c.bf16 %v486_v55, %v484_v49  ;;  %v369_v58 = vpop.f32.mrf.mxu0  ;;  %v409_v59 = vpop.f32.mrf.mxu1 }
  0xa8   :  { %1043 = vst [vmem:[#allocation2 + $0x88] sm:$0xff] %v955_v56  }
  0xa9   :  { %1051 = vst [vmem:[#allocation2 + $0xc8] sm:$0xff] %v995_v57  }
  0xad   :  { %v449_v60 = vpop.f32.mrf.mxu2  ;;  %v489_v61 = vpop.f32.mrf.mxu3 }
  0xae   :  { %v371_v62 = vpop.f32.mrf.mxu0  ;;  %v411_v63 = vpop.f32.mrf.mxu1 }
  0xaf   :  { %v880_v0 = vpack.c.bf16 %v371_v62, %v369_v58  ;;  %v920_v1 = vpack.c.bf16 %v411_v63, %v409_v59 }
  0xb1   :  { %1028 = vst [vmem:[#allocation2 + $0x10] sm:$0xff] %v880_v0  }
  0xb2   :  { %1036 = vst [vmem:[#allocation2 + $0x50] sm:$0xff] %v920_v1  }
  0xb5   :  { %v451_v2 = vpop.f32.mrf.mxu2  ;;  %v491_v3 = vpop.f32.mrf.mxu3 }
  0xb6   :  { %v960_v4 = vpack.c.bf16 %v451_v2, %v449_v60  ;;  %v1000_v5 = vpack.c.bf16 %v491_v3, %v489_v61  ;;  %v374_v6 = vpop.f32.mrf.mxu0  ;;  %v414_v7 = vpop.f32.mrf.mxu1 }
  0xb8   :  { %1044 = vst [vmem:[#allocation2 + $0x90] sm:$0xff] %v960_v4  }
  0xb9   :  { %1052 = vst [vmem:[#allocation2 + $0xd0] sm:$0xff] %v1000_v5  }
  0xbd   :  { %v454_v8 = vpop.f32.mrf.mxu2  ;;  %v494_v9 = vpop.f32.mrf.mxu3 }
  0xbe   :  { %v376_v10 = vpop.f32.mrf.mxu0  ;;  %v416_v11 = vpop.f32.mrf.mxu1 }
  0xbf   :  { %v885_v12 = vpack.c.bf16 %v376_v10, %v374_v6  ;;  %v925_v13 = vpack.c.bf16 %v416_v11, %v414_v7 }
  0xc1   :  { %1029 = vst [vmem:[#allocation2 + $0x18] sm:$0xff] %v885_v12  }
  0xc2   :  { %1037 = vst [vmem:[#allocation2 + $0x58] sm:$0xff] %v925_v13  }
  0xc5   :  { %v456_v14 = vpop.f32.mrf.mxu2  ;;  %v496_v15 = vpop.f32.mrf.mxu3 }
  0xc6   :  { %v965_v16 = vpack.c.bf16 %v456_v14, %v454_v8  ;;  %v1005_v17 = vpack.c.bf16 %v496_v15, %v494_v9  ;;  %v379_v18 = vpop.f32.mrf.mxu0  ;;  %v419_v19 = vpop.f32.mrf.mxu1 }
  0xc8   :  { %1045 = vst [vmem:[#allocation2 + $0x98] sm:$0xff] %v965_v16  }
  0xc9   :  { %1053 = vst [vmem:[#allocation2 + $0xd8] sm:$0xff] %v1005_v17  }
  0xcd   :  { %v459_v20 = vpop.f32.mrf.mxu2  ;;  %v499_v21 = vpop.f32.mrf.mxu3 }
  0xce   :  { %v381_v22 = vpop.f32.mrf.mxu0  ;;  %v421_v23 = vpop.f32.mrf.mxu1 }
  0xcf   :  { %v890_v24 = vpack.c.bf16 %v381_v22, %v379_v18  ;;  %v930_v25 = vpack.c.bf16 %v421_v23, %v419_v19 }
  0xd1   :  { %1030 = vst [vmem:[#allocation2 + $0x20] sm:$0xff] %v890_v24  }
  0xd2   :  { %1038 = vst [vmem:[#allocation2 + $0x60] sm:$0xff] %v930_v25  }
  0xd5   :  { %v461_v26 = vpop.f32.mrf.mxu2  ;;  %v501_v27 = vpop.f32.mrf.mxu3 }
  0xd6   :  { %v970_v28 = vpack.c.bf16 %v461_v26, %v459_v20  ;;  %v1010_v29 = vpack.c.bf16 %v501_v27, %v499_v21  ;;  %v384_v30 = vpop.f32.mrf.mxu0  ;;  %v424_v31 = vpop.f32.mrf.mxu1 }
  0xd8   :  { %1046 = vst [vmem:[#allocation2 + $0xa0] sm:$0xff] %v970_v28  }
  0xd9   :  { %1054 = vst [vmem:[#allocation2 + $0xe0] sm:$0xff] %v1010_v29  }
  0xdd   :  { %v464_v32 = vpop.f32.mrf.mxu2  ;;  %v504_v33 = vpop.f32.mrf.mxu3 }
  0xde   :  { %v386_v34 = vpop.f32.mrf.mxu0  ;;  %v426_v35 = vpop.f32.mrf.mxu1 }
  0xdf   :  { %v895_v36 = vpack.c.bf16 %v386_v34, %v384_v30  ;;  %v935_v37 = vpack.c.bf16 %v426_v35, %v424_v31 }
  0xe1   :  { %1031 = vst [vmem:[#allocation2 + $0x28] sm:$0xff] %v895_v36  }
  0xe2   :  { %1039 = vst [vmem:[#allocation2 + $0x68] sm:$0xff] %v935_v37  }
  0xe5   :  { %v466_v38 = vpop.f32.mrf.mxu2  ;;  %v506_v39 = vpop.f32.mrf.mxu3 }
  0xe6   :  { %v975_v40 = vpack.c.bf16 %v466_v38, %v464_v32  ;;  %v1015_v41 = vpack.c.bf16 %v506_v39, %v504_v33  ;;  %v389_v42 = vpop.f32.mrf.mxu0  ;;  %v429_v43 = vpop.f32.mrf.mxu1 }
  0xe8   :  { %1047 = vst [vmem:[#allocation2 + $0xa8] sm:$0xff] %v975_v40  }
  0xe9   :  { %1055 = vst [vmem:[#allocation2 + $0xe8] sm:$0xff] %v1015_v41  }
  0xed   :  { %v469_v44 = vpop.f32.mrf.mxu2  ;;  %v509_v45 = vpop.f32.mrf.mxu3 }
  0xee   :  { %v391_v46 = vpop.f32.mrf.mxu0  ;;  %v431_v47 = vpop.f32.mrf.mxu1 }
  0xef   :  { %v900_v48 = vpack.c.bf16 %v391_v46, %v389_v42  ;;  %v940_v49 = vpack.c.bf16 %v431_v47, %v429_v43 }
  0xf1   :  { %1032 = vst [vmem:[#allocation2 + $0x30] sm:$0xff] %v900_v48  }
  0xf2   :  { %1040 = vst [vmem:[#allocation2 + $0x70] sm:$0xff] %v940_v49  }
  0xf5   :  { %v471_v50 = vpop.f32.mrf.mxu2  ;;  %v511_v51 = vpop.f32.mrf.mxu3 }
  0xf6   :  { %v980_v52 = vpack.c.bf16 %v471_v50, %v469_v44  ;;  %v1020_v53 = vpack.c.bf16 %v511_v51, %v509_v45  ;;  %v394_v54 = vpop.f32.mrf.mxu0  ;;  %v434_v55 = vpop.f32.mrf.mxu1 }
  0xf8   :  { %1048 = vst [vmem:[#allocation2 + $0xb0] sm:$0xff] %v980_v52  }
  0xf9   :  { %1056 = vst [vmem:[#allocation2 + $0xf0] sm:$0xff] %v1020_v53  }
  0xfd   :  { %v474_v56 = vpop.f32.mrf.mxu2  ;;  %v514_v57 = vpop.f32.mrf.mxu3 }
  0xfe   :  { %v396_v58 = vpop.f32.mrf.mxu0  ;;  %v436_v59 = vpop.f32.mrf.mxu1 }
  0xff   :  { %v905_v60 = vpack.c.bf16 %v396_v58, %v394_v54  ;;  %v945_v61 = vpack.c.bf16 %v436_v59, %v434_v55 }
 0x101   :  { %1033 = vst [vmem:[#allocation2 + $0x38] sm:$0xff] %v905_v60  }
 0x102   :  { %1041 = vst [vmem:[#allocation2 + $0x78] sm:$0xff] %v945_v61  }
 0x105   :  { %v476_v62 = vpop.f32.mrf.mxu2  ;;  %v516_v63 = vpop.f32.mrf.mxu3 }
 0x106   :  { %v985_v0 = vpack.c.bf16 %v476_v62, %v474_v56  ;;  %v1025_v1 = vpack.c.bf16 %v516_v63, %v514_v57 }
 0x108   :  { %1049 = vst [vmem:[#allocation2 + $0xb8] sm:$0xff] %v985_v0  }
 0x109   :  { %1057 = vst [vmem:[#allocation2 + $0xf8] sm:$0xff] %v1025_v1  }
 0x10a   :  { %659 = dma.vmem_to_hbm [thread:$0]  %s652_s19, 4096, %s654_s21, [#allocation3], %s1094_s22, %s1094_s22, %s1095_s23  }
 0x10b   :  { %1091 = dma.done.wait [#allocation3], 4096  }
 0x10c   :  { %1092 = vsyncadd [#allocation3], 4294963200 }
 0x10d   :  { %664 = vsyncpa [#allocation3], 1 }

</bundles_post_ra>
